<compile_context>
chip_gen: v7x
topology: tpu7x:2x2x1
jax: 0.10.0
libtpu: 0.0.40
codegen_flags: <defaults>
</compile_context>

<pallas_src>
import math

import jax
import jax.numpy as jnp
from jax import lax
from jax.experimental import pallas as pl
from jax.experimental.pallas import tpu as pltpu


def _round_up(x, m):
    return (x + m - 1) // m * m


def _cdiv(a, b):
    return -(-a // b)


def make_mlp_kernel(num_hidden, in_dim, in_pad):
    """Fused kernel: num_hidden x (Linear + ReLU) followed by a final (transposed) Linear."""
    needs_pad = in_pad > in_dim

    def kernel(*refs):
        refs = list(refs)
        xpad_ref = refs.pop() if needs_pad else None   # VMEM scratch (tm, in_pad) f32
        x_ref = refs[0]
        o_ref = refs[-1]
        params = refs[1:-1]

        if needs_pad:
            # Zero-pad x to 128 lanes inside VMEM (done every step so it is correct
            # under megacore grid sharding). Padded lanes hit zero weight rows.
            xpad_ref[...] = jnp.zeros_like(xpad_ref)
            xpad_ref[:, :in_dim] = x_ref[...]
            h = xpad_ref[...].astype(jnp.bfloat16)
        else:
            h = x_ref[...].astype(jnp.bfloat16)

        for i in range(num_hidden):
            w = params[2 * i][...]        # (fi_p, fo_p) bf16
            b = params[2 * i + 1][...]    # (1, fo_p)   f32
            a = jnp.dot(h, w, preferred_element_type=jnp.float32) + b
            h = jnp.maximum(a, 0.0).astype(jnp.bfloat16)   # ReLU in f32, re-pack to bf16
            # TODO(synk): nn.Dropout(p) is identity in eval mode; train-mode dropout not emitted.

        w_t = params[-2][...]             # (out_sub, hlast_p) bf16, pre-transposed
        b_t = params[-1][...]             # (out_sub, 1)       f32
        # o^T = W_out^T @ h^T as an NT matmul (contract last dims) -> (out_sub, tm):
        # the store is lane-dense over the batch (8 sublanes instead of 128 padded lanes).
        o_t = lax.dot_general(
            w_t, h, (((1,), (1,)), ((), ())),
            preferred_element_type=jnp.float32)
        o_ref[...] = (o_t + b_t).astype(o_ref.dtype)

    return kernel


def prepare_mlp_params(params):
    """One-time layout prep (do this at init, reuse across calls).

    params: flat [W1, b1, ..., Wn, bn, Wout, bout] with W as (in, out), b as (1, out).
    Returns (prepared_params, out_dim):
      hidden layers:  W padded to (128k, 128k) bf16, b padded to (1, 128k) f32.
      output layer:   stored TRANSPOSED as (round_up(out,8), 128k) bf16 and (round_up(out,8), 1) f32.
    Zero padding is a mathematical no-op (zero weight rows/cols, zero bias, ReLU(0)=0).
    """
    num_hidden = len(params) // 2 - 1
    prepared = []
    for i in range(num_hidden):
        w, b = params[2 * i], params[2 * i + 1]
        fi, fo = w.shape
        fi_p, fo_p = _round_up(fi, 128), _round_up(fo, 128)
        w_p = jnp.zeros((fi_p, fo_p), jnp.bfloat16).at[:fi, :fo].set(w.astype(jnp.bfloat16))
        b_p = jnp.zeros((1, fo_p), jnp.float32).at[:, :fo].set(
            jnp.reshape(b, (1, fo)).astype(jnp.float32))
        prepared += [w_p, b_p]

    w, b = params[-2], params[-1]
    fi, fo = w.shape                       # (hiddens[-1], output_channel)
    fi_p = _round_up(fi, 128)
    fo_s = _round_up(fo, 8)
    w_t = jnp.zeros((fo_s, fi_p), jnp.bfloat16).at[:fo, :fi].set(w.astype(jnp.bfloat16).T)
    b_t = jnp.zeros((fo_s, 1), jnp.float32).at[:fo, :].set(
        jnp.reshape(b, (fo, 1)).astype(jnp.float32))
    prepared += [w_t, b_t]
    return prepared, fo


def mlp_forward(x, prepared_params, out_dim, *, block_batch=2048):
    """x: (B, input_channel) f32.  prepared_params: output of prepare_mlp_params."""
    num_hidden = len(prepared_params) // 2 - 1
    B, in_dim = x.shape
    in_pad = prepared_params[0].shape[0]
    out_sub, hlast_pad = prepared_params[-2].shape

    widths = [in_pad, hlast_pad] + [prepared_params[2 * i].shape[1] for i in range(num_hidden)]
    max_w = max(widths)

    # ---- batch tiling: large balanced tiles; >=2 tiles for big B (v7x megacore) ----
    if B < 256:
        tm = _round_up(B, 8)               # single grid step for small batches
    else:
        n_tiles = max(_cdiv(B, block_batch), 2)
        tm = _round_up(_cdiv(B, n_tiles), 128)
        # Light VMEM guard: keep per-tile activations comfortably under budget.
        while tm > 128 and tm * max_w * 6 > (24 << 20):
            tm = _round_up(tm // 2, 128)
    n_tiles = _cdiv(B, tm)
    b_pad = n_tiles * tm

    x = x.astype(jnp.float32)
    x_p = x if b_pad == B else jnp.pad(x, ((0, b_pad - B), (0, 0)))

    # ---- specs: x/out walk the batch axis; weights stay VMEM-resident, single-buffered ----
    in_specs = [pl.BlockSpec((tm, in_dim), lambda i: (i, 0))]
    for p in prepared_params:
        in_specs.append(
            pl.BlockSpec(p.shape, lambda i: (0, 0), pipeline_mode=pl.Buffered(1)))
    out_spec = pl.BlockSpec((out_sub, tm), lambda i: (0, i))

    scratch = []
    if in_pad > in_dim:
        scratch.append(pltpu.VMEM((tm, in_pad), jnp.float32))

    # ---- cost / VMEM budgeting ----
    param_bytes = sum(int(p.size) * p.dtype.itemsize for p in prepared_params)
    flops = 0
    for i in range(num_hidden):
        fi_p, fo_p = prepared_params[2 * i].shape
        flops += 2 * b_pad * fi_p * fo_p
    flops += 2 * b_pad * hlast_pad * out_sub
    bytes_accessed = b_pad * in_dim * 4 + out_sub * b_pad * 4 + param_bytes

    act_bytes = tm * max_w * 6 * 2                                   # f32 pre-act + bf16 act, x2 slack
    io_bytes = 2 * (tm * in_dim * 4 + out_sub * tm * 4) + tm * in_pad * 4
    vmem_limit = int(min(max((param_bytes + act_bytes + io_bytes) * 2, 32 << 20), 112 << 20))

    out_t = pl.pallas_call(
        make_mlp_kernel(num_hidden, in_dim, in_pad),
        out_shape=jax.ShapeDtypeStruct((out_sub, b_pad), jnp.float32),
        grid=(n_tiles,),
        in_specs=in_specs,
        out_specs=out_spec,
        scratch_shapes=scratch,
        compiler_params=pltpu.CompilerParams(
            dimension_semantics=("parallel",),
            vmem_limit_bytes=vmem_limit),
        cost_estimate=pl.CostEstimate(
            flops=flops, transcendentals=0, bytes_accessed=bytes_accessed),
    )(x_p, *prepared_params)

    # Transposed, padded output -> (B, out_dim); slicing/transpose fuse into the caller's jit.
    return out_t[:out_dim, :B].T


def init_linear(key, fan_in, fan_out):
    """Mimics PyTorch nn.Linear default init (uniform +/- 1/sqrt(fan_in)).

    Weight returned as (fan_in, fan_out) so the math is x @ W; bias as (1, fan_out).
    """
    kw, kb = jax.random.split(key)
    bound = 1.0 / math.sqrt(fan_in)
    w = jax.random.uniform(kw, (fan_in, fan_out), jnp.float32, -bound, bound)
    b = jax.random.uniform(kb, (1, fan_out), jnp.float32, -bound, bound)
    return w, b


def init_mlp_params(key, input_channel, hiddens, output_channel):
    params = []
    prev = input_channel
    for h in hiddens:
        key, sub = jax.random.split(key)
        w, b = init_linear(sub, prev, h)
        params += [w, b]
        prev = h
    key, sub = jax.random.split(key)
    w, b = init_linear(sub, prev, output_channel)
    params += [w, b]
    return params


def mlp_reference(x, params):
    """Pure-JAX f32 reference for correctness check."""
    num_hidden = len(params) // 2 - 1
    h = x
    for i in range(num_hidden):
        h = jnp.maximum(h @ params[2 * i] + params[2 * i + 1], 0.0)
    return h @ params[-2] + params[-1]


if __name__ == "__main__":
    # Small shapes consistent with the module (use_image=False path).
    input_channel = 4
    hiddens = [32, 32]
    output_channel = 1

    key = jax.random.PRNGKey(0)
    key_x, key_p = jax.random.split(key)
    params = init_mlp_params(key_p, input_channel, hiddens, output_channel)

    # One-time layout prep (padding / bf16 cast / output-layer transpose), reused across calls.
    prepared_params, out_dim = prepare_mlp_params(params)
    fwd = jax.jit(lambda xx, pp: mlp_forward(xx, pp, out_dim, block_batch=128))

    # Multi-tile batch: B=300 -> tm=128, grid=(3,), exercises batch padding + pipeline.
    x1 = jax.random.normal(key_x, (300, input_channel), dtype=jnp.float32)
    out1 = jax.block_until_ready(fwd(x1, prepared_params))
    ref1 = mlp_reference(x1, params)
    assert out1.shape == (300, output_channel), out1.shape
    # bf16 matmul inputs (f32 accumulation) -> loosened tolerance vs pure-f32 reference.
    assert jnp.allclose(out1, ref1, atol=5e-2, rtol=5e-2)

    # Small batch: B=64 -> single grid step (tm=64), full-array blocks.
    x2 = jax.random.normal(jax.random.PRNGKey(1), (64, input_channel), dtype=jnp.float32)
    out2 = jax.block_until_ready(fwd(x2, prepared_params))
    ref2 = mlp_reference(x2, params)
    assert out2.shape == (64, output_channel), out2.shape
    assert jnp.allclose(out2, ref2, atol=5e-2, rtol=5e-2)

    print("KERNEL_OK")
</pallas_src>

<mosaic_0001>
module attributes {stable_mosaic.version = 11 : i64} {
  func.func @kernel(%arg0: i32, %arg1: memref<128x4xf32, #tpu.memory_space<vmem>>, %arg2: memref<128x128xbf16, #tpu.memory_space<vmem>>, %arg3: memref<1x128xf32, #tpu.memory_space<vmem>>, %arg4: memref<128x128xbf16, #tpu.memory_space<vmem>>, %arg5: memref<1x128xf32, #tpu.memory_space<vmem>>, %arg6: memref<8x128xbf16, #tpu.memory_space<vmem>>, %arg7: memref<8x1xf32, #tpu.memory_space<vmem>>, %arg8: memref<8x128xf32, #tpu.memory_space<vmem>>, %arg9: memref<128x128xf32, #tpu.memory_space<vmem>>) attributes {dimension_semantics = [#tpu.dimension_semantics<parallel>], iteration_bounds = array<i64: 3>, scalar_prefetch = 0 : i64, scratch_operands = 1 : i64, tpu.core_type = #tpu.core_type<tc>, window_params = [{transform_indices = @transform_0, window_bounds = array<i64: 128, 4>}, {pipeline_mode = #tpu.pipeline_mode<synchronous>, transform_indices = @transform_1, window_bounds = array<i64: 128, 128>}, {pipeline_mode = #tpu.pipeline_mode<synchronous>, transform_indices = @transform_2, window_bounds = array<i64: 1, 128>}, {pipeline_mode = #tpu.pipeline_mode<synchronous>, transform_indices = @transform_3, window_bounds = array<i64: 128, 128>}, {pipeline_mode = #tpu.pipeline_mode<synchronous>, transform_indices = @transform_4, window_bounds = array<i64: 1, 128>}, {pipeline_mode = #tpu.pipeline_mode<synchronous>, transform_indices = @transform_5, window_bounds = array<i64: 8, 128>}, {pipeline_mode = #tpu.pipeline_mode<synchronous>, transform_indices = @transform_6, window_bounds = array<i64: 8, 1>}, {transform_indices = @transform_7, window_bounds = array<i64: 8, 128>}]} {
    %cst = arith.constant 0.000000e+00 : f32
    %0 = vector.broadcast %cst : f32 to vector<128x128xf32>
    %c0 = arith.constant 0 : index
    %c0_0 = arith.constant 0 : index
    %1 = vector.load %arg9[%c0, %c0_0] : memref<128x128xf32, #tpu.memory_space<vmem>>, vector<128x128xf32>
    tpu.vector_store %arg9[%c0, %c0_0], %0 {strides = array<i32>} : memref<128x128xf32, #tpu.memory_space<vmem>>, vector<128x128xf32>,
    %c0_1 = arith.constant 0 : index
    %c0_2 = arith.constant 0 : index
    %2 = vector.load %arg1[%c0_1, %c0_2] : memref<128x4xf32, #tpu.memory_space<vmem>>, vector<128x4xf32>
    %c0_3 = arith.constant 0 : index
    %c0_4 = arith.constant 0 : index
    %3 = vector.load %arg9[%c0_3, %c0_4] : memref<128x128xf32, #tpu.memory_space<vmem>>, vector<128x4xf32>
    tpu.vector_store %arg9[%c0_3, %c0_4], %2 {strides = array<i32>} : memref<128x128xf32, #tpu.memory_space<vmem>>, vector<128x4xf32>,
    %c0_5 = arith.constant 0 : index
    %c0_6 = arith.constant 0 : index
    %4 = vector.load %arg9[%c0_5, %c0_6] : memref<128x128xf32, #tpu.memory_space<vmem>>, vector<128x128xf32>
    %5 = arith.truncf %4 : vector<128x128xf32> to vector<128x128xbf16>
    %c0_7 = arith.constant 0 : index
    %c0_8 = arith.constant 0 : index
    %6 = vector.load %arg2[%c0_7, %c0_8] : memref<128x128xbf16, #tpu.memory_space<vmem>>, vector<128x128xbf16>
    %c0_9 = arith.constant 0 : index
    %c0_10 = arith.constant 0 : index
    %7 = vector.load %arg3[%c0_9, %c0_10] : memref<1x128xf32, #tpu.memory_space<vmem>>, vector<1x128xf32>
    %cst_11 = arith.constant dense<0.000000e+00> : vector<128x128xf32>
    %8 = tpu.matmul %5, %6, %cst_11 {dimension_numbers = #tpu.dot_dimension_numbers<[1], [0], [0], [1], [0, 0, 1, 1], [], []>} : vector<128x128xbf16>, vector<128x128xbf16>, vector<128x128xf32> -> vector<128x128xf32>
    %9 = vector.broadcast %7 : vector<1x128xf32> to vector<128x128xf32>
    %10 = arith.addf %8, %9 : vector<128x128xf32>
    %cst_12 = arith.constant 0.000000e+00 : f32
    %11 = vector.broadcast %cst_12 : f32 to vector<128x128xf32>
    %12 = arith.maximumf %10, %11 : vector<128x128xf32>
    %13 = arith.truncf %12 : vector<128x128xf32> to vector<128x128xbf16>
    %c0_13 = arith.constant 0 : index
    %c0_14 = arith.constant 0 : index
    %14 = vector.load %arg4[%c0_13, %c0_14] : memref<128x128xbf16, #tpu.memory_space<vmem>>, vector<128x128xbf16>
    %c0_15 = arith.constant 0 : index
    %c0_16 = arith.constant 0 : index
    %15 = vector.load %arg5[%c0_15, %c0_16] : memref<1x128xf32, #tpu.memory_space<vmem>>, vector<1x128xf32>
    %cst_17 = arith.constant dense<0.000000e+00> : vector<128x128xf32>
    %16 = tpu.matmul %13, %14, %cst_17 {dimension_numbers = #tpu.dot_dimension_numbers<[1], [0], [0], [1], [0, 0, 1, 1], [], []>} : vector<128x128xbf16>, vector<128x128xbf16>, vector<128x128xf32> -> vector<128x128xf32>
    %17 = vector.broadcast %15 : vector<1x128xf32> to vector<128x128xf32>
    %18 = arith.addf %16, %17 : vector<128x128xf32>
    %cst_18 = arith.constant 0.000000e+00 : f32
    %19 = vector.broadcast %cst_18 : f32 to vector<128x128xf32>
    %20 = arith.maximumf %18, %19 : vector<128x128xf32>
    %21 = arith.truncf %20 : vector<128x128xf32> to vector<128x128xbf16>
    %c0_19 = arith.constant 0 : index
    %c0_20 = arith.constant 0 : index
    %22 = vector.load %arg6[%c0_19, %c0_20] : memref<8x128xbf16, #tpu.memory_space<vmem>>, vector<8x128xbf16>
    %c0_21 = arith.constant 0 : index
    %c0_22 = arith.constant 0 : index
    %23 = vector.load %arg7[%c0_21, %c0_22] : memref<8x1xf32, #tpu.memory_space<vmem>>, vector<8x1xf32>
    %cst_23 = arith.constant dense<0.000000e+00> : vector<8x128xf32>
    %24 = tpu.matmul %22, %21, %cst_23 {dimension_numbers = #tpu.dot_dimension_numbers<[1], [1], [0], [0], [0, 0, 1, 0], [], []>} : vector<8x128xbf16>, vector<128x128xbf16>, vector<8x128xf32> -> vector<8x128xf32>
    %25 = vector.broadcast %23 : vector<8x1xf32> to vector<8x128xf32>
    %26 = arith.addf %24, %25 : vector<8x128xf32>
    %c0_24 = arith.constant 0 : index
    %c0_25 = arith.constant 0 : index
    %27 = vector.load %arg8[%c0_24, %c0_25] : memref<8x128xf32, #tpu.memory_space<vmem>>, vector<8x128xf32>
    tpu.vector_store %arg8[%c0_24, %c0_25], %26 {strides = array<i32>} : memref<8x128xf32, #tpu.memory_space<vmem>>, vector<8x128xf32>,
    return
  }
  func.func @transform_0(%arg0: i32) -> (i32, i32) {
    %c0_i32 = arith.constant 0 : i32
    %c0_i32_0 = arith.constant 0 : i32
    return %arg0, %c0_i32 : i32, i32
  }
  func.func @transform_1(%arg0: i32) -> (i32, i32) {
    %c0_i32 = arith.constant 0 : i32
    %c0_i32_0 = arith.constant 0 : i32
    %c0_i32_1 = arith.constant 0 : i32
    return %c0_i32, %c0_i32_0 : i32, i32
  }
  func.func @transform_2(%arg0: i32) -> (i32, i32) {
    %c0_i32 = arith.constant 0 : i32
    %c0_i32_0 = arith.constant 0 : i32
    %c0_i32_1 = arith.constant 0 : i32
    return %c0_i32, %c0_i32_0 : i32, i32
  }
  func.func @transform_3(%arg0: i32) -> (i32, i32) {
    %c0_i32 = arith.constant 0 : i32
    %c0_i32_0 = arith.constant 0 : i32
    %c0_i32_1 = arith.constant 0 : i32
    return %c0_i32, %c0_i32_0 : i32, i32
  }
  func.func @transform_4(%arg0: i32) -> (i32, i32) {
    %c0_i32 = arith.constant 0 : i32
    %c0_i32_0 = arith.constant 0 : i32
    %c0_i32_1 = arith.constant 0 : i32
    return %c0_i32, %c0_i32_0 : i32, i32
  }
  func.func @transform_5(%arg0: i32) -> (i32, i32) {
    %c0_i32 = arith.constant 0 : i32
    %c0_i32_0 = arith.constant 0 : i32
    %c0_i32_1 = arith.constant 0 : i32
    return %c0_i32, %c0_i32_0 : i32, i32
  }
  func.func @transform_6(%arg0: i32) -> (i32, i32) {
    %c0_i32 = arith.constant 0 : i32
    %c0_i32_0 = arith.constant 0 : i32
    %c0_i32_1 = arith.constant 0 : i32
    return %c0_i32, %c0_i32_0 : i32, i32
  }
  func.func @transform_7(%arg0: i32) -> (i32, i32) {
    %c0_i32 = arith.constant 0 : i32
    %c0_i32_0 = arith.constant 0 : i32
    return %c0_i32, %arg0 : i32, i32
  }
}

</mosaic_0001>

<bundles_post_ra>
// kernel: _lambda_.1
= control target key start
LH: loop header
LB: loop body
LE: loop exit
PB: predicated region body
PF: predicated region fallthrough
CT: control target
= control target key end

     0   :  { %s1070_s24 = smov 0   ;;  %s1211_s0 = inlined_call_operand.vmem [shape: f32[384,4], index: 0, kind: input, shape index: {}]   ;;  %s1212_s1 = inlined_call_operand.vmem [shape: bf16[128,128], index: 1, kind: input, shape index: {}]   ;;  %s1213_s2 = inlined_call_operand.vmem [shape: f32[1,128], index: 2, kind: input, shape index: {}]   ;;  %s1214_s3 = inlined_call_operand.vmem [shape: bf16[128,128], index: 3, kind: input, shape index: {}]   ;;  %s1215_s4 = inlined_call_operand.vmem [shape: f32[1,128], index: 4, kind: input, shape index: {}]   ;;  %s1216_s5 = inlined_call_operand.vmem [shape: bf16[8,128], index: 5, kind: input, shape index: {}]   ;;  %s1217_s6 = inlined_call_operand.vmem [shape: f32[8,1], index: 6, kind: input, shape index: {}]   ;;  %s1218_s7 = inlined_call_operand.vmem [shape: f32[8,384], index: 7, kind: output, shape index: {}]  }
   0x1 LB: > { %s1076_s25 = sadd.s32 4294967295, %s1025_s24   ;;  %p842_p0 = scmp.ge.s32.totalorder %s1025_s24, 1  ;;  %s1025_s24 = sphi %s1070_s24, %s17_s24  }
   0x2   : > { %p238_p1 = scmp.lt.s32.totalorder %s1025_s24, 4 }
   0x4   : > { %p239_p2 = pnand %p842_p0, %p238_p1 }
   0x5   : > { %v1003_v0 = vld [vmem:[%s1212_s1] sm:$0xff] (!%p239_p2)   ;;  %s843_s28 = sshll.u32 (!%p239_p2), %s1076_s25, 4  ;;  %v1004_v1 = vld [vmem:[%s1212_s1 + $0x8] sm:$0xff] (!%p239_p2)   ;;  %v1027_v2 = vmov (!%p239_p2), 0.0   ;;  %v1005_v3 = vld [vmem:[%s1212_s1 + $0x10] sm:$0xff] (!%p239_p2)   ;;  %vm312_vm0 = vcmask (!%p239_p2), 31744  }
   0x6   : > { %242 = sbr.rel (%p239_p2) target bundleno = 759 (0x2f7), region = 48  ;;  %p270_p3 = scmp.lt.s32.totalorder (!%p239_p2), %s843_s28, 47  ;;  %907 = vmatprep.subr.bf16.mxu1 (!%p239_p2), %v1003_v0  ;;  %280 = vst [vmem:[#allocation2] sm:$0xff] (!%p239_p2), %v1027_v2  ;;  %281 = vst [vmem:[#allocation2 + $0x8] sm:$0xff] (!%p239_p2), %v1027_v2  ;;  %971 = vmatprep.subr.bf16.mxu0 (!%p239_p2), %v1027_v2  ;;  %v1006_v4 = vld [vmem:[%s1212_s1 + $0x18] sm:$0xff] (!%p239_p2)   ;;  %v1007_v11 = vld [vmem:[%s1212_s1 + $0x20] sm:$0xff] (!%p239_p2)  }
   0x7   : > { %908 = vmatpush3.bf16.msra.mxu1 (!%p239_p2), %v1003_v0  ;;  %282 = vst [vmem:[#allocation2 + $0x10] sm:$0xff] (!%p239_p2), %v1027_v2  ;;  %283 = vst [vmem:[#allocation2 + $0x18] sm:$0xff] (!%p239_p2), %v1027_v2  ;;  %v1008_v22 = vld [vmem:[%s1212_s1 + $0x28] sm:$0xff] (!%p239_p2)   ;;  %v1009_v26 = vld [vmem:[%s1212_s1 + $0x30] sm:$0xff] (!%p239_p2)   ;;  %vm1028_vm1 = vmmov (!%p239_p2), 0   ;;  %p275_p4 = scmp.lt.s32.totalorder (!%p239_p2), %s1076_s25, 2 }
   0x8   : > { %284 = vst [vmem:[#allocation2 + $0x20] sm:$0xff] (!%p239_p2), %v1027_v2  ;;  %285 = vst [vmem:[#allocation2 + $0x28] sm:$0xff] (!%p239_p2), %v1027_v2  ;;  %909 = vmatprep.subr.bf16.mxu1 (!%p239_p2), %v1004_v1  ;;  %v1010_v27 = vld [vmem:[%s1212_s1 + $0x38] sm:$0xff] (!%p239_p2)   ;;  %v1011_v32 = vld [vmem:[%s1214_s3] sm:$0xff] (!%p239_p2)   ;;  %987 = vmatprep.mubr.msk.bf16.mxu0 (!%p239_p2), %vm1028_vm1, %v1027_v2 }
   0x9   : > { %286 = vst [vmem:[#allocation2 + $0x30] sm:$0xff] (!%p239_p2), %v1027_v2  ;;  %287 = vst [vmem:[#allocation2 + $0x38] sm:$0xff] (!%p239_p2), %v1027_v2  ;;  %v1012_v35 = vld [vmem:[%s1214_s3 + $0x8] sm:$0xff] (!%p239_p2)   ;;  %v1013_v40 = vld [vmem:[%s1214_s3 + $0x10] sm:$0xff] (!%p239_p2)  }
   0xa   : > { %288 = vst [vmem:[#allocation2 + $0x40] sm:$0xff] (!%p239_p2), %v1027_v2  ;;  %289 = vst [vmem:[#allocation2 + $0x48] sm:$0xff] (!%p239_p2), %v1027_v2  ;;  %v1014_v43 = vld [vmem:[%s1214_s3 + $0x18] sm:$0xff] (!%p239_p2)   ;;  %v1015_v48 = vld [vmem:[%s1214_s3 + $0x20] sm:$0xff] (!%p239_p2)  }
   0xb   : > { %290 = vst [vmem:[#allocation2 + $0x50] sm:$0xff] (!%p239_p2), %v1027_v2  ;;  %291 = vst [vmem:[#allocation2 + $0x58] sm:$0xff] (!%p239_p2), %v1027_v2  ;;  %910 = vmatpush3.bf16.msra.mxu1 (!%p239_p2), %v1004_v1  ;;  %v1016_v51 = vld [vmem:[%s1214_s3 + $0x28] sm:$0xff] (!%p239_p2)   ;;  %v1017_v55 = vld [vmem:[%s1214_s3 + $0x30] sm:$0xff] (!%p239_p2)  }
   0xc   : > { %292 = vst [vmem:[#allocation2 + $0x60] sm:$0xff] (!%p239_p2), %v1027_v2  ;;  %293 = vst [vmem:[#allocation2 + $0x68] sm:$0xff] (!%p239_p2), %v1027_v2  ;;  %911 = vmatprep.subr.bf16.mxu1 (!%p239_p2), %v1005_v3  ;;  %v1018_v56 = vld [vmem:[%s1214_s3 + $0x38] sm:$0xff] (!%p239_p2)   ;;  %v846_v57 = vld [vmem:[%s1213_s2] ss:$0 sm:$0xff] (!%p239_p2) }
   0xd   : > { %s1220_s28 = smov (!%p270_p3, %s843_s28), 47  ;;  %294 = vst [vmem:[#allocation2 + $0x70] sm:$0xff] %v1027_v2  ;;  %295 = vst [vmem:[#allocation2 + $0x78] sm:$0xff] %v1027_v2  ;;  %s1222_s25 = smov (!%p275_p4, %s1076_s25), 2 }
   0xe   : > { %s844_s10 = sshll.u32 %s1220_s28, 3  ;;  %s845_s29 = sshll.u32 %s1222_s25, 3 }
   0xf   : > { %s1110_s13 = scalar_lea.vmem %s1211_s0, %s844_s10  ;;  %912 = vmatpush3.bf16.msra.mxu1 %v1005_v3  ;;  %s278_s9 = scalar_lea.vmem %s1218_s7, %s845_s29 }
  0x10   : > { %v296_v5 = vld [vmem:[%s1110_s13] sm:$0xff]  ;;  %v297_v6 = vld [vmem:[%s1110_s13 + $0x8] sm:$0xff]  ;;  %v298_v7 = vld [vmem:[%s1110_s13 + $0x10] sm:$0xff]  ;;  %913 = vmatprep.subr.bf16.mxu1 %v1006_v4 }
  0x11   : > { %313 = vst.msk [vmem:[#allocation2] sm:$0xff] %vm312_vm0, %v296_v5  ;;  %314 = vst.msk [vmem:[#allocation2 + $0x8] sm:$0xff] %vm312_vm0, %v297_v6  ;;  %v299_v8 = vld [vmem:[%s1110_s13 + $0x18] sm:$0xff]  ;;  %v300_v9 = vld [vmem:[%s1110_s13 + $0x20] sm:$0xff] }
  0x12   : > { %315 = vst.msk [vmem:[#allocation2 + $0x10] sm:$0xff] %vm312_vm0, %v298_v7  ;;  %v301_v10 = vld [vmem:[%s1110_s13 + $0x28] sm:$0xff]  ;;  %316 = vst.msk [vmem:[#allocation2 + $0x18] sm:$0xff] %vm312_vm0, %v299_v8  ;;  %v302_v12 = vld [vmem:[%s1110_s13 + $0x30] sm:$0xff] }
  0x13   : > { %317 = vst.msk [vmem:[#allocation2 + $0x20] sm:$0xff] %vm312_vm0, %v300_v9  ;;  %318 = vst.msk [vmem:[#allocation2 + $0x28] sm:$0xff] %vm312_vm0, %v301_v10  ;;  %v303_v13 = vld [vmem:[%s1110_s13 + $0x38] sm:$0xff]  ;;  %v304_v14 = vld [vmem:[%s1110_s13 + $0x40] sm:$0xff]  ;;  %914 = vmatpush3.bf16.msra.mxu1 %v1006_v4 }
  0x14   : > { %319 = vst.msk [vmem:[#allocation2 + $0x30] sm:$0xff] %vm312_vm0, %v302_v12  ;;  %320 = vst.msk [vmem:[#allocation2 + $0x38] sm:$0xff] %vm312_vm0, %v303_v13  ;;  %v305_v15 = vld [vmem:[%s1110_s13 + $0x48] sm:$0xff]  ;;  %v306_v16 = vld [vmem:[%s1110_s13 + $0x50] sm:$0xff]  ;;  %915 = vmatprep.subr.bf16.mxu1 %v1007_v11 }
  0x15   : > { %321 = vst.msk [vmem:[#allocation2 + $0x40] sm:$0xff] %vm312_vm0, %v304_v14  ;;  %v307_v17 = vld [vmem:[%s1110_s13 + $0x58] sm:$0xff]  ;;  %322 = vst.msk [vmem:[#allocation2 + $0x48] sm:$0xff] %vm312_vm0, %v305_v15  ;;  %v308_v18 = vld [vmem:[%s1110_s13 + $0x60] sm:$0xff] }
  0x16   : > { %323 = vst.msk [vmem:[#allocation2 + $0x50] sm:$0xff] %vm312_vm0, %v306_v16  ;;  %324 = vst.msk [vmem:[#allocation2 + $0x58] sm:$0xff] %vm312_vm0, %v307_v17  ;;  %v309_v19 = vld [vmem:[%s1110_s13 + $0x68] sm:$0xff]  ;;  %v310_v20 = vld [vmem:[%s1110_s13 + $0x70] sm:$0xff] }
  0x17   : > { %325 = vst.msk [vmem:[#allocation2 + $0x60] sm:$0xff] %vm312_vm0, %v308_v18  ;;  %326 = vst.msk [vmem:[#allocation2 + $0x68] sm:$0xff] %vm312_vm0, %v309_v19  ;;  %v311_v21 = vld [vmem:[%s1110_s13 + $0x78] sm:$0xff]  ;;  %916 = vmatpush3.bf16.msra.mxu1 %v1007_v11 }
  0x18   : > { %327 = vst.msk [vmem:[#allocation2 + $0x70] sm:$0xff] %vm312_vm0, %v310_v20  ;;  %328 = vst.msk [vmem:[#allocation2 + $0x78] sm:$0xff] %vm312_vm0, %v311_v21  ;;  %v329_v23 = vld [vmem:[#allocation2] sm:$0xff]  ;;  %v330_v24 = vld [vmem:[#allocation2 + $0x8] sm:$0xff]  ;;  %917 = vmatprep.subr.bf16.mxu1 %v1008_v22 }
  0x19   : > { %v345_v25 = vpack.c.bf16 %v330_v24, %v329_v23  ;;  %v331_v28 = vld [vmem:[#allocation2 + $0x10] sm:$0xff]  ;;  %v332_v29 = vld [vmem:[#allocation2 + $0x18] sm:$0xff] }
  0x1a   : > { %v333_v30 = vld [vmem:[#allocation2 + $0x20] sm:$0xff]  ;;  %v334_v31 = vld [vmem:[#allocation2 + $0x28] sm:$0xff]  ;;  %v346_v33 = vpack.c.bf16 %v332_v29, %v331_v28 }
  0x1b   : > { %923 = vmatprep.mubr.bf16.mxu1 %v345_v25  ;;  %918 = vmatpush3.bf16.msra.mxu1 %v1008_v22  ;;  %v347_v34 = vpack.c.bf16 %v334_v31, %v333_v30  ;;  %v335_v36 = vld [vmem:[#allocation2 + $0x30] sm:$0xff]  ;;  %v336_v37 = vld [vmem:[#allocation2 + $0x38] sm:$0xff] }
  0x1c   : > { %919 = vmatprep.subr.bf16.mxu1 %v1009_v26  ;;  %v337_v38 = vld [vmem:[#allocation2 + $0x40] sm:$0xff]  ;;  %v338_v39 = vld [vmem:[#allocation2 + $0x48] sm:$0xff]  ;;  %v348_v41 = vpack.c.bf16 %v336_v37, %v335_v36 }
  0x1d   : > { %v349_v42 = vpack.c.bf16 %v338_v39, %v337_v38  ;;  %v339_v44 = vld [vmem:[#allocation2 + $0x50] sm:$0xff]  ;;  %v340_v45 = vld [vmem:[#allocation2 + $0x58] sm:$0xff] }
  0x1e   : > { %v341_v46 = vld [vmem:[#allocation2 + $0x60] sm:$0xff]  ;;  %v342_v47 = vld [vmem:[#allocation2 + $0x68] sm:$0xff]  ;;  %v350_v49 = vpack.c.bf16 %v340_v45, %v339_v44 }
  0x1f   : > { %920 = vmatpush3.bf16.msra.mxu1 %v1009_v26  ;;  %v351_v50 = vpack.c.bf16 %v342_v47, %v341_v46  ;;  %v343_v52 = vld [vmem:[#allocation2 + $0x70] sm:$0xff]  ;;  %v344_v53 = vld [vmem:[#allocation2 + $0x78] sm:$0xff] }
  0x20   : > { %921 = vmatprep.subr.bf16.mxu1 %v1010_v27  ;;  %v352_v54 = vpack.c.bf16 %v344_v53, %v343_v52  ;;  %v1029_v52 = vmov 0   ;;  %v855_v53 = vld [vmem:[%s1215_s4] ss:$0 sm:$0xff] }
  0x21   : > { %1002 = vset.pattern.permute.xlu0 %v1029_v52 }
  0x23   : > { %922 = vmatpush3.bf16.msra.mxu1 %v1010_v27 }
  0x24   : > { %939 = vmatprep.subr.bf16.mxu1 %v1011_v32 }
  0x26   : > { %924 = vmatmul.mubr.bf16.vlgmr.msra.gmra.mrb[0].mxu1 %v346_v33 }
  0x27   : > { %927 = vmatprep.mubr.bf16.mxu1 %v347_v34  ;;  %940 = vmatpush3.bf16.msra.mxu1 %v1011_v32 }
  0x28   : > { %941 = vmatprep.subr.bf16.mxu1 %v1012_v35 }
  0x2b   : > { %942 = vmatpush3.bf16.msra.mxu1 %v1012_v35 }
  0x2c   : > { %943 = vmatprep.subr.bf16.mxu1 %v1013_v40 }
  0x2e   : > { %928 = vmatmul.mubr.bf16.gmra.mrb[4].mxu1 %v348_v41 }
  0x2f   : > { %931 = vmatprep.mubr.bf16.mxu1 %v349_v42  ;;  %944 = vmatpush3.bf16.msra.mxu1 %v1013_v40 }
  0x30   : > { %945 = vmatprep.subr.bf16.mxu1 %v1014_v43 }
  0x33   : > { %946 = vmatpush3.bf16.msra.mxu1 %v1014_v43 }
  0x34   : > { %947 = vmatprep.subr.bf16.mxu1 %v1015_v48 }
  0x36   : > { %932 = vmatmul.mubr.bf16.gmra.mrb[8].mxu1 %v350_v49 }
  0x37   : > { %935 = vmatprep.mubr.bf16.mxu1 %v351_v50  ;;  %948 = vmatpush3.bf16.msra.mxu1 %v1015_v48 }
  0x38   : > { %949 = vmatprep.subr.bf16.mxu1 %v1016_v51 }
  0x3b   : > { %950 = vmatpush3.bf16.msra.mxu1 %v1016_v51  ;;  %v738_v51 = vld [vmem:[%s1217_s6] sm:$0xff] }
  0x3c   : > { %951 = vmatprep.subr.bf16.mxu1 %v1017_v55  ;;  %741 = vperm.xlu0 %1002, %v738_v51  }
  0x3e   : > { %936 = vmatmul.mubr.bf16.gmra.mrb[12].mxu1 %v352_v54 }
  0x3f   : > { %952 = vmatpush3.bf16.msra.mxu1 %v1017_v55 }
  0x40   : > { %953 = vmatprep.subr.bf16.mxu1 %v1018_v56 }
  0x43   : > { %954 = vmatpush3.bf16.msra.mxu1 %v1018_v56 }
  0xf9   : > { %v925_v58 = vpop.f32.mrb[0].mxu1 }
  0xfa   : > { %v467_v59 = vadd.f32 %v925_v58, %v846_v57  ;;  %v458_v60 = vpop.f32.mrb[1].mxu1 }
  0xfb   : > { %v459_v61 = vadd.f32 %v846_v57, %v458_v60  ;;  %v926_v62 = vpop.f32.mrb[2].mxu1 }
  0xfc   : > { %v470_v63 = vadd.f32 %v926_v62, %v846_v57  ;;  %v461_v0 = vpop.f32.mrb[3].mxu1  ;;  %v523_v3 = vmax.f32 %v467_v59, 0.0 }
  0xfd   : > { %v462_v1 = vadd.f32 %v846_v57, %v461_v0  ;;  %v521_v5 = vmax.f32 %v459_v61, 0.0 }
  0xfe   : > { %v524_v4 = vmax.f32 %v470_v63, 0.0 }
  0xff   : > { %v522_v6 = vmax.f32 %v462_v1, 0.0 }
 0x100   : > { %v538_v7 = vpack.c.bf16 %v524_v4, %v523_v3 }
 0x101   : > { %v537_v8 = vpack.c.bf16 %v522_v6, %v521_v5  ;;  %v929_v9 = vpop.f32.mrb[4].mxu1 }
 0x102   : > { %v483_v10 = vadd.f32 %v929_v9, %v846_v57  ;;  %v474_v11 = vpop.f32.mrb[5].mxu1 }
 0x103   : > { %v475_v12 = vadd.f32 %v846_v57, %v474_v11  ;;  %955 = vmatprep.mubr.bf16.mxu1 %v537_v8  ;;  %v930_v13 = vpop.f32.mrb[6].mxu1 }
 0x104   : > { %v527_v14 = vmax.f32 %v483_v10, 0.0  ;;  %v486_v15 = vadd.f32 %v930_v13, %v846_v57  ;;  %956 = vmatmul.mubr.bf16.vlgmr.msra.gmra.mrb[16].mxu1 %v538_v7  ;;  %v477_v16 = vpop.f32.mrb[7].mxu1 }
 0x105   : > { %v525_v17 = vmax.f32 %v475_v12, 0.0  ;;  %v478_v18 = vadd.f32 %v846_v57, %v477_v16 }
 0x106   : > { %v528_v19 = vmax.f32 %v486_v15, 0.0 }
 0x107   : > { %v526_v20 = vmax.f32 %v478_v18, 0.0 }
 0x108   : > { %v540_v21 = vpack.c.bf16 %v528_v19, %v527_v14 }
 0x109   : > { %v539_v22 = vpack.c.bf16 %v526_v20, %v525_v17  ;;  %v933_v23 = vpop.f32.mrb[8].mxu1 }
 0x10a   : > { %v499_v24 = vadd.f32 %v933_v23, %v846_v57  ;;  %v490_v25 = vpop.f32.mrb[9].mxu1 }
 0x10b   : > { %959 = vmatprep.mubr.bf16.mxu1 %v539_v22  ;;  %v491_v26 = vadd.f32 %v846_v57, %v490_v25  ;;  %v934_v27 = vpop.f32.mrb[10].mxu1 }
 0x10c   : > { %960 = vmatmul.mubr.bf16.gmra.mrb[20].mxu1 %v540_v21  ;;  %v531_v28 = vmax.f32 %v499_v24, 0.0  ;;  %v502_v29 = vadd.f32 %v934_v27, %v846_v57  ;;  %v493_v30 = vpop.f32.mrb[11].mxu1 }
 0x10d   : > { %v529_v31 = vmax.f32 %v491_v26, 0.0  ;;  %v494_v32 = vadd.f32 %v846_v57, %v493_v30 }
 0x10e   : > { %v532_v33 = vmax.f32 %v502_v29, 0.0 }
 0x10f   : > { %v530_v34 = vmax.f32 %v494_v32, 0.0 }
 0x110   : > { %v542_v35 = vpack.c.bf16 %v532_v33, %v531_v28 }
 0x111   : > { %v541_v36 = vpack.c.bf16 %v530_v34, %v529_v31  ;;  %v937_v37 = vpop.f32.mrb[12].mxu1 }
 0x112   : > { %v515_v38 = vadd.f32 %v937_v37, %v846_v57  ;;  %v506_v39 = vpop.f32.mrb[13].mxu1 }
 0x113   : > { %963 = vmatprep.mubr.bf16.mxu1 %v541_v36  ;;  %v507_v40 = vadd.f32 %v846_v57, %v506_v39  ;;  %v938_v41 = vpop.f32.mrb[14].mxu1 }
 0x114   : > { %964 = vmatmul.mubr.bf16.gmra.mrb[24].mxu1 %v542_v35  ;;  %v535_v42 = vmax.f32 %v515_v38, 0.0  ;;  %v518_v43 = vadd.f32 %v938_v41, %v846_v57  ;;  %v509_v44 = vpop.f32.mrb[15].mxu1 }
 0x115   : > { %v533_v45 = vmax.f32 %v507_v40, 0.0  ;;  %v510_v46 = vadd.f32 %v846_v57, %v509_v44 }
 0x116   : > { %v536_v47 = vmax.f32 %v518_v43, 0.0 }
 0x117   : > { %v534_v48 = vmax.f32 %v510_v46, 0.0 }
 0x118   : > { %v544_v49 = vpack.c.bf16 %v536_v47, %v535_v42  ;;  %v737_v47 = vld [vmem:[%s1216_s5] sm:$0xf] }
 0x119   : > { %v543_v50 = vpack.c.bf16 %v534_v48, %v533_v45  ;;  %v742_v48 = vpop.permute.xlu0 %741 }
 0x11b   : > { %967 = vmatprep.mubr.bf16.mxu1 %v543_v50 }
 0x11c   : > { %968 = vmatmul.mubr.bf16.gmra.mrb[28].mxu1 %v544_v49 }
 0x1d7   : > { %v957_v54 = vpop.f32.mrb[16].mxu1 }
 0x1d8   : > { %v659_v55 = vadd.f32 %v957_v54, %v855_v53  ;;  %v650_v56 = vpop.f32.mrb[17].mxu1 }
 0x1d9   : > { %v651_v57 = vadd.f32 %v855_v53, %v650_v56  ;;  %v958_v58 = vpop.f32.mrb[18].mxu1 }
 0x1da   : > { %v662_v59 = vadd.f32 %v958_v58, %v855_v53  ;;  %v653_v60 = vpop.f32.mrb[19].mxu1  ;;  %v715_v62 = vmax.f32 %v659_v55, 0.0 }
 0x1db   : > { %v654_v61 = vadd.f32 %v855_v53, %v653_v60  ;;  %v713_v0 = vmax.f32 %v651_v57, 0.0 }
 0x1dc   : > { %v716_v63 = vmax.f32 %v662_v59, 0.0 }
 0x1dd   : > { %v714_v1 = vmax.f32 %v654_v61, 0.0 }
 0x1de   : > { %v730_v3 = vpack.c.bf16 %v716_v63, %v715_v62 }
 0x1df   : > { %v961_v4 = vpop.f32.mrb[20].mxu1  ;;  %v729_v5 = vpack.c.bf16 %v714_v1, %v713_v0 }
 0x1e0   : > { %v675_v6 = vadd.f32 %v961_v4, %v855_v53  ;;  %v666_v7 = vpop.f32.mrb[21].mxu1 }
 0x1e1   : > { %v667_v8 = vadd.f32 %v855_v53, %v666_v7  ;;  %972 = vmatpush3.bf16.xpose.msra.mxu0 %v729_v5  ;;  %v962_v9 = vpop.f32.mrb[22].mxu1 }
 0x1e2   : > { %v719_v10 = vmax.f32 %v675_v6, 0.0  ;;  %v678_v11 = vadd.f32 %v962_v9, %v855_v53  ;;  %v669_v12 = vpop.f32.mrb[23].mxu1  ;;  %973 = vmatprep.subr.bf16.mxu0 %v1027_v2 }
 0x1e3   : > { %v717_v13 = vmax.f32 %v667_v8, 0.0  ;;  %v670_v14 = vadd.f32 %v855_v53, %v669_v12 }
 0x1e4   : > { %v720_v15 = vmax.f32 %v678_v11, 0.0 }
 0x1e5   : > { %v718_v16 = vmax.f32 %v670_v14, 0.0 }
 0x1e6   : > { %v732_v17 = vpack.c.bf16 %v720_v15, %v719_v10 }
 0x1e7   : > { %v731_v18 = vpack.c.bf16 %v718_v16, %v717_v13  ;;  %v965_v19 = vpop.f32.mrb[24].mxu1 }
 0x1e8   : > { %v691_v20 = vadd.f32 %v965_v19, %v855_v53  ;;  %v682_v21 = vpop.f32.mrb[25].mxu1 }
 0x1e9   : > { %974 = vmatpush3.bf16.xpose.msra.mxu0 %v730_v3  ;;  %v683_v22 = vadd.f32 %v855_v53, %v682_v21  ;;  %v966_v23 = vpop.f32.mrb[26].mxu1 }
 0x1ea   : > { %v723_v24 = vmax.f32 %v691_v20, 0.0  ;;  %975 = vmatprep.subr.bf16.mxu0 %v1027_v2  ;;  %v694_v25 = vadd.f32 %v966_v23, %v855_v53  ;;  %v685_v26 = vpop.f32.mrb[27].mxu1 }
 0x1eb   : > { %v721_v27 = vmax.f32 %v683_v22, 0.0  ;;  %v686_v28 = vadd.f32 %v855_v53, %v685_v26 }
 0x1ec   : > { %v724_v29 = vmax.f32 %v694_v25, 0.0 }
 0x1ed   : > { %v722_v30 = vmax.f32 %v686_v28, 0.0 }
 0x1ee   : > { %v734_v31 = vpack.c.bf16 %v724_v29, %v723_v24 }
 0x1ef   : > { %v733_v32 = vpack.c.bf16 %v722_v30, %v721_v27  ;;  %v969_v33 = vpop.f32.mrb[28].mxu1 }
 0x1f0   : > { %v707_v34 = vadd.f32 %v969_v33, %v855_v53  ;;  %v698_v35 = vpop.f32.mrb[29].mxu1 }
 0x1f1   : > { %976 = vmatpush3.bf16.xpose.msra.mxu0 %v731_v18  ;;  %v699_v36 = vadd.f32 %v855_v53, %v698_v35  ;;  %v970_v37 = vpop.f32.mrb[30].mxu1 }
 0x1f2   : > { %977 = vmatprep.subr.bf16.mxu0 %v1027_v2  ;;  %v727_v38 = vmax.f32 %v707_v34, 0.0  ;;  %v710_v39 = vadd.f32 %v970_v37, %v855_v53  ;;  %v701_v40 = vpop.f32.mrb[31].mxu1 }
 0x1f3   : > { %v725_v41 = vmax.f32 %v699_v36, 0.0  ;;  %v702_v42 = vadd.f32 %v855_v53, %v701_v40 }
 0x1f4   : > { %v728_v43 = vmax.f32 %v710_v39, 0.0 }
 0x1f5   : > { %v726_v44 = vmax.f32 %v702_v42, 0.0 }
 0x1f6   : > { %v736_v45 = vpack.c.bf16 %v728_v43, %v727_v38 }
 0x1f7   : > { %v735_v46 = vpack.c.bf16 %v726_v44, %v725_v41 }
 0x1f9   : > { %978 = vmatpush3.bf16.xpose.msra.mxu0 %v732_v17 }
 0x1fa   : > { %979 = vmatprep.subr.bf16.mxu0 %v1027_v2 }
 0x201   : > { %980 = vmatpush3.bf16.xpose.msra.mxu0 %v733_v32 }
 0x202   : > { %981 = vmatprep.subr.bf16.mxu0 %v1027_v2 }
 0x209   : > { %982 = vmatpush3.bf16.xpose.msra.mxu0 %v734_v31 }
 0x20a   : > { %983 = vmatprep.subr.bf16.mxu0 %v1027_v2 }
 0x211   : > { %984 = vmatpush3.bf16.xpose.msra.mxu0 %v735_v46 }
 0x212   : > { %985 = vmatprep.subr.bf16.mxu0 %v1027_v2 }
 0x219   : > { %986 = vmatpush3.bf16.xpose.msra.mxu0 %v736_v45 }
 0x220   : > { %988 = vmatmul.mubr.bf16.vlgmr.msra.gmra.mrb[0].mxu0 %v737_v47 }
 0x2f3   : > { %v778_v49 = vpop.f32.mrb[0].mxu0 }
 0x2f4   : > { %v779_v50 = vadd.f32 %v778_v49, %v742_v48  ;;  %v989_v51 = vpop.f32.mrb[1].mxu0 }
 0x2f5   : > { %v781_v52 = vpop.f32.mrb[2].mxu0 }
 0x2f6   : > { %784 = vst [vmem:[%s278_s9] sm:$0xff] %v779_v50  ;;  %v990_v2 = vpop.f32.mrb[3].mxu0 }
 0x2f7 PF: > { %s17_s24 = sadd.s32 1, %s1025_s24  }
 0x2f8   : > { %p14_p5 = scmp.ge.s32.totalorder %s17_s24, 5  }
 0x2fa   :  { %16 = sbr.rel (!%p14_p5) target bundleno = 1 (0x1), region = 78 }

</bundles_post_ra>
